<compile_context>
chip_gen: v7x
topology: tpu7x:2x2x1
jax: 0.10.0
libtpu: 0.0.40
codegen_flags: <defaults>
</compile_context>

<pallas_src>
import numpy as np
import jax
import jax.numpy as jnp
from jax.experimental import pallas as pl
from jax.experimental.pallas import tpu as pltpu


def _round_up(n, m):
    return ((n + m - 1) // m) * m


# ---------------------------------------------------------------------------
# Add_value (folded):  ind = v @ (W_blockdiag @ W_out) + b @ W_out
# Tiny GEMV far below MXU granularity -> plain jnp (XLA fuses it fine).
# ---------------------------------------------------------------------------
def add_value(v, wbd, bias, wout):
    w_comb = wbd @ wout                 # (num_g*gama, 1)
    b_comb = bias @ wout                # (1, 1)
    return v @ w_comb + b_comb          # == (v @ wbd + bias) @ wout


# ---------------------------------------------------------------------------
# Fused per-edge kernel (LinkPred + Interact_value.message pre-softmax parts),
# transposed layout: edges on lanes, features on sublanes.
#
#   pw_link[p*g+q, e] = sender[p,e] * receiver[q,e]
#   loc   = w2 . ReLU(w1 @ pw_link + b1) + b2
#   s     = clip(sigmoid(loc)*(imax-imin)+imin, 0, 1)              (Hardtanh(0,1))
#   pen   = sigmoid(loc - temp*log2(-imin/imax))                   (l0 penalty term)
#   att   = LeakyReLU( sum_p x_i[p] * (A  @ x_j)[p], 0.2 )         (== pw_int @ a)
#   plin  = sum_p x_i[p] * (Wl @ x_j)[p]                           (== pw_int @ lin.w^T)
# Output block: lane-dense (4, tile_e) slab; rows = [s, pen, att, plin].
# ---------------------------------------------------------------------------
def edge_compute(edge_attr, params, l0_para, tile_e=None):
    E, _, g = edge_attr.shape
    H = params['w1'].shape[1]
    assert g % 2 == 0, "gama must be even (pw scratch written in 2*gama-row blocks)"

    # Lane-dense tiles up to 2048 lanes; keep >= ~4 "parallel" grid steps at large E
    # so v7x's two TensorCores (and megacore sharding) both get work.  Per-tile VMEM
    # footprint is < ~2 MiB, far below any generation's limit.
    e128 = _round_up(max(E, 1), 128)
    if tile_e is None:
        tile_e = min(2048, e128, _round_up(max(e128 // 4, 1), 128))
        tile_e = max(tile_e, 128)
    Ep = _round_up(e128, tile_e)

    # Single stacked bf16 edge-feature slab: rows [0:g] = sender (x_j), [g:2g] = receiver (x_i).
    featT = jnp.zeros((2 * g, Ep), jnp.bfloat16)
    featT = featT.at[:, :E].set(edge_attr.reshape(E, 2 * g).astype(jnp.bfloat16).T)

    # Constants (fetched once; w1T in bf16 for the MXU, the rest tiny f32).
    w1T = params['w1'].T.astype(jnp.bfloat16)                      # (H, g*g)
    b1c = params['b1'].reshape(H, 1).astype(jnp.float32)           # (H, 1)
    w2c = params['w2'].reshape(H, 1).astype(jnp.float32)           # (H, 1)
    b2s = params['b2'].reshape(1, 1).astype(jnp.float32)           # (1, 1)
    AW = jnp.concatenate([params['a'].reshape(g, g),
                          params['wlin'].reshape(g, g)], axis=0).astype(jnp.float32)  # (2g, g)

    temp, imin, imax = float(l0_para[0]), float(l0_para[1]), float(l0_para[2])
    log2c = float(np.log2(-imin / imax))   # spec uses np.log2 (matches PyTorch code)

    def kernel(feat_ref, w1T_ref, b1_ref, w2_ref, b2_ref, AW_ref, out_ref, pw_ref):
        feat = feat_ref[...].astype(jnp.float32)   # (2g, T) upcast once after load
        T = feat.shape[1]
        xj = feat[:g, :]                           # (g, T) sender feats == x_j
        xi = feat[g:, :]                           # (g, T) receiver feats == x_i

        # pw_link[p*g+q, e] = sender[p,e] * receiver[q,e]; write bf16 VMEM scratch in
        # 16-row, packed-tile-aligned blocks (two sender rows per store).
        for p in range(0, g, 2):
            blk = jnp.concatenate(
                [xj[p:p + 1, :] * xi, xj[p + 1:p + 2, :] * xi], axis=0)   # (2g, T) f32
            pw_ref[pl.ds(p * g, 2 * g), :] = blk.astype(jnp.bfloat16)

        # LinkPred MLP (eval path; Dropout(0.5) is identity).  bf16 MXU, f32 accumulate.
        h = jnp.dot(w1T_ref[...], pw_ref[...], preferred_element_type=jnp.float32)
        h = jnp.maximum(h + b1_ref[...], 0.0)                              # (H, T)
        # w2 projection: lane-broadcast multiply + sublane reduction (no M=1 MXU pass).
        loc = jnp.sum(h * w2_ref[...], axis=0, keepdims=True) + b2_ref[...]  # (1, T)

        sig = 1.0 / (1.0 + jnp.exp(-loc))
        s = jnp.clip(sig * (imax - imin) + imin, 0.0, 1.0)                # Hardtanh(0,1)
        pen = 1.0 / (1.0 + jnp.exp(-(loc - temp * log2c)))                # l0 sigmoid term

        # Interact_value bilinear forms, factorized (pw_int never materialized):
        #   att = LeakyReLU(x_i^T A x_j), plin = x_i^T WL x_j ; A/WL stacked in one LHS.
        awx = jnp.dot(AW_ref[...], xj, preferred_element_type=jnp.float32)   # (2g, T)
        att = jnp.sum(awx[:g, :] * xi, axis=0, keepdims=True)
        att = jnp.where(att >= 0.0, att, 0.2 * att)                       # LeakyReLU(0.2)
        plin = jnp.sum(awx[g:, :] * xi, axis=0, keepdims=True)

        out_ref[...] = jnp.concatenate([s, pen, att, plin], axis=0)       # (4, T)

    feat_spec = pl.BlockSpec((2 * g, tile_e), lambda i: (0, i))
    out_spec = pl.BlockSpec((4, tile_e), lambda i: (0, i))

    def const_spec(a):
        return pl.BlockSpec(a.shape, lambda i: (0,) * a.ndim)

    out = pl.pallas_call(
        kernel,
        out_shape=jax.ShapeDtypeStruct((4, Ep), jnp.float32),
        grid=(Ep // tile_e,),
        in_specs=[feat_spec, const_spec(w1T), const_spec(b1c), const_spec(w2c),
                  const_spec(b2s), const_spec(AW)],
        out_specs=out_spec,
        scratch_shapes=[pltpu.VMEM((g * g, tile_e), jnp.bfloat16)],
        compiler_params=pltpu.CompilerParams(dimension_semantics=("parallel",)),
    )(featT, w1T, b1c, w2c, b2s, AW)

    return out[0, :E], out[1, :E], out[2, :E], out[3, :E]   # s, pen, att, plin


# ---------------------------------------------------------------------------
# Parameters (deterministic synthetic init, shapes match the PyTorch module)
# ---------------------------------------------------------------------------
def init_params(key, num_g, gama, hidden):
    G2 = gama * gama
    keys = jax.random.split(key, 8)
    # Add_value: layers1[i] = Linear(gama, 1) -> block-diagonal weight [num_g*gama, num_g]
    wg = 0.1 * jax.random.normal(keys[0], (num_g, gama), jnp.float32)
    bg = 0.1 * jax.random.normal(keys[1], (num_g,), jnp.float32)
    wbd = jnp.zeros((num_g * gama, num_g), jnp.float32)
    for i in range(num_g):
        wbd = wbd.at[i * gama:(i + 1) * gama, i].set(wg[i])
    wout = 0.1 * jax.random.normal(keys[2], (num_g, 1), jnp.float32)  # outlayer (no bias)
    # LinkPred: linear1 (gama*gama -> H), linear2 (H -> 1)
    w1 = 0.1 * jax.random.normal(keys[3], (G2, hidden), jnp.float32)
    b1 = 0.1 * jax.random.normal(keys[4], (1, hidden), jnp.float32)
    w2 = 0.1 * jax.random.normal(keys[5], (hidden, 1), jnp.float32)
    b2 = jnp.zeros((1, 1), jnp.float32)
    # Interact_value: attention vector a [gama*gama, 1], lin (gama*gama -> 1, no bias)
    a_vec = 0.5 * jax.random.normal(keys[6], (G2, 1), jnp.float32)
    wlin = 0.1 * jax.random.normal(keys[7], (G2, 1), jnp.float32)
    return dict(wbd=wbd, bg=bg.reshape(1, num_g), wout=wout,
                w1=w1, b1=b1, w2=w2, b2=b2, a=a_vec, wlin=wlin)


# ---------------------------------------------------------------------------
# Comp_value.forward  (pred_edges == 1, is_training=False / eval path)
# ---------------------------------------------------------------------------
def comp_value_forward(params, x, edge_index, edge_attr, batch, num_graphs,
                       num_g, gama, l0_para=(0.66, -0.1, 1.1)):
    # TODO(synk): training-mode stochastic L0 gate (torch.rand_like) and Dropout(0.5)
    # are omitted; the deterministic eval branch is implemented.
    N = x.shape[0]

    # ---- Add_value (folded double-linear, plain jnp) ----
    v = x.reshape(-1, num_g * gama)
    ind_value = add_value(v, params['wbd'], params['bg'], params['wout'])

    # ---- LinkPred + Interact_value per-edge compute (fused Pallas kernel) ----
    # sr = transpose(edge_attr, 0, 1): sender feats = edge_attr[:,0,:], receiver = edge_attr[:,1,:].
    # In this pipeline edge_attr == [x[src], x[dst]], so the same stacked stream also
    # serves as x_j / x_i for Interact_value (de-duplicated input traffic).
    dst = edge_index[1]                         # PyG: x_i = target (receiver) = edge_index[1]
    s, pen, att, plin = edge_compute(edge_attr, params, l0_para)

    l0_penaty = jnp.mean(pen)

    # construct_pred_edge: keep edges with s > 0 (static-shape masked equivalent)
    mask = s > 0.0
    num_edges = jnp.sum(mask.astype(jnp.int32))

    # TODO(synk): at realistic E, the receiver-softmax/segment ops below are extra
    # HBM passes over edge-sized data; they could be pulled into the Pallas path via a
    # scalar-prefetched (dst-sorted) edge_index.  Kept as XLA segment ops here.
    att_m = jnp.where(mask, att, -jnp.inf)
    gmax = jax.ops.segment_max(att_m, dst, num_segments=N)
    gmax = jnp.where(jnp.isfinite(gmax), gmax, 0.0)
    e = jnp.where(mask, jnp.exp(att - gmax[dst]), 0.0)
    denom = jax.ops.segment_sum(e, dst, num_segments=N) + 1e-16
    att_w = e / denom[dst]

    # message = lin(att_weight * pairwise) * edge_weight == att_w * plin * s ; aggr='add'
    msg = att_w * plin * jnp.where(mask, s, 0.0)
    updated_nodes = jax.ops.segment_sum(msg, dst, num_segments=N)[:, None]  # [N, 1]

    # global_mean_pool
    g_sum = jax.ops.segment_sum(updated_nodes, batch, num_segments=num_graphs)
    g_cnt = jax.ops.segment_sum(jnp.ones((N, 1), jnp.float32), batch, num_segments=num_graphs)
    graph_embedding = g_sum / g_cnt

    out = graph_embedding + ind_value
    return out, l0_penaty, num_edges


# ---------------------------------------------------------------------------
if __name__ == "__main__":
    num_g = 4          # feature fields per graph (nodes per graph)
    gama = 8           # feature embedding dim
    hidden = 32        # LinkPred hidden layer H
    num_graphs = 2
    N = num_graphs * num_g

    key = jax.random.PRNGKey(0)
    k_x, k_p = jax.random.split(key)
    params = init_params(k_p, num_g, gama, hidden)

    x = jax.random.normal(k_x, (N, gama), jnp.float32)
    batch = jnp.repeat(jnp.arange(num_graphs, dtype=jnp.int32), num_g)

    # fully connected (no self loops) within each graph
    src_list, dst_list = [], []
    for g in range(num_graphs):
        base = g * num_g
        for i in range(num_g):
            for j in range(num_g):
                if i != j:
                    src_list.append(base + i)
                    dst_list.append(base + j)
    edge_index = jnp.array([src_list, dst_list], dtype=jnp.int32)          # [2, E]
    edge_attr = jnp.stack([x[edge_index[0]], x[edge_index[1]]], axis=1)    # [E, 2, gama]

    out, l0_penaty, num_edges = comp_value_forward(
        params, x, edge_index, edge_attr, batch, num_graphs, num_g, gama,
        l0_para=(0.66, -0.1, 1.1))

    jax.block_until_ready((out, l0_penaty, num_edges))
    assert out.shape == (num_graphs, 1)
    assert jnp.all(jnp.isfinite(out))
    print("KERNEL_OK")
</pallas_src>

<mosaic_0001>
module attributes {stable_mosaic.version = 11 : i64} {
  func.func @kernel(%arg0: i32, %arg1: memref<16x128xbf16, #tpu.memory_space<vmem>>, %arg2: memref<32x64xbf16, #tpu.memory_space<vmem>>, %arg3: memref<32x1xf32, #tpu.memory_space<vmem>>, %arg4: memref<32x1xf32, #tpu.memory_space<vmem>>, %arg5: memref<1x1xf32, #tpu.memory_space<vmem>>, %arg6: memref<16x8xf32, #tpu.memory_space<vmem>>, %arg7: memref<4x128xf32, #tpu.memory_space<vmem>>, %arg8: memref<64x128xbf16, #tpu.memory_space<vmem>>) attributes {dimension_semantics = [#tpu.dimension_semantics<parallel>], iteration_bounds = array<i64: 1>, scalar_prefetch = 0 : i64, scratch_operands = 1 : i64, tpu.core_type = #tpu.core_type<tc>, window_params = [{transform_indices = @transform_0, window_bounds = array<i64: 16, 128>}, {pipeline_mode = #tpu.pipeline_mode<synchronous>, transform_indices = @transform_1, window_bounds = array<i64: 32, 64>}, {pipeline_mode = #tpu.pipeline_mode<synchronous>, transform_indices = @transform_2, window_bounds = array<i64: 32, 1>}, {pipeline_mode = #tpu.pipeline_mode<synchronous>, transform_indices = @transform_3, window_bounds = array<i64: 32, 1>}, {pipeline_mode = #tpu.pipeline_mode<synchronous>, transform_indices = @transform_4, window_bounds = array<i64: 1, 1>}, {pipeline_mode = #tpu.pipeline_mode<synchronous>, transform_indices = @transform_5, window_bounds = array<i64: 16, 8>}, {transform_indices = @transform_6, window_bounds = array<i64: 4, 128>}]} {
    %c0 = arith.constant 0 : index
    %c0_0 = arith.constant 0 : index
    %0 = vector.load %arg1[%c0, %c0_0] : memref<16x128xbf16, #tpu.memory_space<vmem>>, vector<16x128xbf16>
    %1 = arith.extf %0 : vector<16x128xbf16> to vector<16x128xf32>
    %2 = vector.extract_strided_slice %1 {offsets = [0, 0], sizes = [8, 128], strides = [1, 1]} : vector<16x128xf32> to vector<8x128xf32>
    %3 = vector.extract_strided_slice %1 {offsets = [8, 0], sizes = [8, 128], strides = [1, 1]} : vector<16x128xf32> to vector<8x128xf32>
    %4 = vector.extract_strided_slice %2 {offsets = [0, 0], sizes = [1, 128], strides = [1, 1]} : vector<8x128xf32> to vector<1x128xf32>
    %5 = vector.broadcast %4 : vector<1x128xf32> to vector<8x128xf32>
    %6 = arith.mulf %5, %3 : vector<8x128xf32>
    %7 = vector.extract_strided_slice %2 {offsets = [1, 0], sizes = [1, 128], strides = [1, 1]} : vector<8x128xf32> to vector<1x128xf32>
    %8 = vector.broadcast %7 : vector<1x128xf32> to vector<8x128xf32>
    %9 = arith.mulf %8, %3 : vector<8x128xf32>
    %10 = tpu.concatenate %6, %9 in 0 : vector<8x128xf32>, vector<8x128xf32> -> vector<16x128xf32>
    %11 = arith.truncf %10 : vector<16x128xf32> to vector<16x128xbf16>
    %c0_1 = arith.constant 0 : index
    %c0_2 = arith.constant 0 : index
    %12 = vector.load %arg8[%c0_1, %c0_2] : memref<64x128xbf16, #tpu.memory_space<vmem>>, vector<16x128xbf16>
    tpu.vector_store %arg8[%c0_1, %c0_2], %11 {strides = array<i32>} : memref<64x128xbf16, #tpu.memory_space<vmem>>, vector<16x128xbf16>,
    %13 = vector.extract_strided_slice %2 {offsets = [2, 0], sizes = [1, 128], strides = [1, 1]} : vector<8x128xf32> to vector<1x128xf32>
    %14 = vector.broadcast %13 : vector<1x128xf32> to vector<8x128xf32>
    %15 = arith.mulf %14, %3 : vector<8x128xf32>
    %16 = vector.extract_strided_slice %2 {offsets = [3, 0], sizes = [1, 128], strides = [1, 1]} : vector<8x128xf32> to vector<1x128xf32>
    %17 = vector.broadcast %16 : vector<1x128xf32> to vector<8x128xf32>
    %18 = arith.mulf %17, %3 : vector<8x128xf32>
    %19 = tpu.concatenate %15, %18 in 0 : vector<8x128xf32>, vector<8x128xf32> -> vector<16x128xf32>
    %20 = arith.truncf %19 : vector<16x128xf32> to vector<16x128xbf16>
    %c16 = arith.constant 16 : index
    %c0_3 = arith.constant 0 : index
    %21 = vector.load %arg8[%c16, %c0_3] : memref<64x128xbf16, #tpu.memory_space<vmem>>, vector<16x128xbf16>
    tpu.vector_store %arg8[%c16, %c0_3], %20 {strides = array<i32>} : memref<64x128xbf16, #tpu.memory_space<vmem>>, vector<16x128xbf16>,
    %22 = vector.extract_strided_slice %2 {offsets = [4, 0], sizes = [1, 128], strides = [1, 1]} : vector<8x128xf32> to vector<1x128xf32>
    %23 = vector.broadcast %22 : vector<1x128xf32> to vector<8x128xf32>
    %24 = arith.mulf %23, %3 : vector<8x128xf32>
    %25 = vector.extract_strided_slice %2 {offsets = [5, 0], sizes = [1, 128], strides = [1, 1]} : vector<8x128xf32> to vector<1x128xf32>
    %26 = vector.broadcast %25 : vector<1x128xf32> to vector<8x128xf32>
    %27 = arith.mulf %26, %3 : vector<8x128xf32>
    %28 = tpu.concatenate %24, %27 in 0 : vector<8x128xf32>, vector<8x128xf32> -> vector<16x128xf32>
    %29 = arith.truncf %28 : vector<16x128xf32> to vector<16x128xbf16>
    %c32 = arith.constant 32 : index
    %c0_4 = arith.constant 0 : index
    %30 = vector.load %arg8[%c32, %c0_4] : memref<64x128xbf16, #tpu.memory_space<vmem>>, vector<16x128xbf16>
    tpu.vector_store %arg8[%c32, %c0_4], %29 {strides = array<i32>} : memref<64x128xbf16, #tpu.memory_space<vmem>>, vector<16x128xbf16>,
    %31 = vector.extract_strided_slice %2 {offsets = [6, 0], sizes = [1, 128], strides = [1, 1]} : vector<8x128xf32> to vector<1x128xf32>
    %32 = vector.broadcast %31 : vector<1x128xf32> to vector<8x128xf32>
    %33 = arith.mulf %32, %3 : vector<8x128xf32>
    %34 = vector.extract_strided_slice %2 {offsets = [7, 0], sizes = [1, 128], strides = [1, 1]} : vector<8x128xf32> to vector<1x128xf32>
    %35 = vector.broadcast %34 : vector<1x128xf32> to vector<8x128xf32>
    %36 = arith.mulf %35, %3 : vector<8x128xf32>
    %37 = tpu.concatenate %33, %36 in 0 : vector<8x128xf32>, vector<8x128xf32> -> vector<16x128xf32>
    %38 = arith.truncf %37 : vector<16x128xf32> to vector<16x128xbf16>
    %c48 = arith.constant 48 : index
    %c0_5 = arith.constant 0 : index
    %39 = vector.load %arg8[%c48, %c0_5] : memref<64x128xbf16, #tpu.memory_space<vmem>>, vector<16x128xbf16>
    tpu.vector_store %arg8[%c48, %c0_5], %38 {strides = array<i32>} : memref<64x128xbf16, #tpu.memory_space<vmem>>, vector<16x128xbf16>,
    %c0_6 = arith.constant 0 : index
    %c0_7 = arith.constant 0 : index
    %40 = vector.load %arg2[%c0_6, %c0_7] : memref<32x64xbf16, #tpu.memory_space<vmem>>, vector<32x64xbf16>
    %c0_8 = arith.constant 0 : index
    %c0_9 = arith.constant 0 : index
    %41 = vector.load %arg8[%c0_8, %c0_9] : memref<64x128xbf16, #tpu.memory_space<vmem>>, vector<64x128xbf16>
    %cst = arith.constant dense<0.000000e+00> : vector<32x128xf32>
    %42 = tpu.matmul %40, %41, %cst {dimension_numbers = #tpu.dot_dimension_numbers<[1], [0], [0], [1], [0, 0, 1, 1], [], []>} : vector<32x64xbf16>, vector<64x128xbf16>, vector<32x128xf32> -> vector<32x128xf32>
    %c0_10 = arith.constant 0 : index
    %c0_11 = arith.constant 0 : index
    %43 = vector.load %arg3[%c0_10, %c0_11] : memref<32x1xf32, #tpu.memory_space<vmem>>, vector<32x1xf32>
    %44 = vector.broadcast %43 : vector<32x1xf32> to vector<32x128xf32>
    %45 = arith.addf %42, %44 : vector<32x128xf32>
    %cst_12 = arith.constant 0.000000e+00 : f32
    %46 = vector.broadcast %cst_12 : f32 to vector<32x128xf32>
    %47 = arith.maximumf %45, %46 : vector<32x128xf32>
    %c0_13 = arith.constant 0 : index
    %c0_14 = arith.constant 0 : index
    %48 = vector.load %arg4[%c0_13, %c0_14] : memref<32x1xf32, #tpu.memory_space<vmem>>, vector<32x1xf32>
    %49 = vector.broadcast %48 : vector<32x1xf32> to vector<32x128xf32>
    %50 = arith.mulf %47, %49 : vector<32x128xf32>
    %cst_15 = arith.constant dense<0.000000e+00> : vector<128xf32>
    %51 = vector.multi_reduction <add>, %50, %cst_15 [0] : vector<32x128xf32> to vector<128xf32>
    %52 = vector.shape_cast %51 : vector<128xf32> to vector<1x128xf32>
    %c0_16 = arith.constant 0 : index
    %c0_17 = arith.constant 0 : index
    %53 = vector.load %arg5[%c0_16, %c0_17] : memref<1x1xf32, #tpu.memory_space<vmem>>, vector<1x1xf32>
    %54 = vector.broadcast %53 : vector<1x1xf32> to vector<1x128xf32>
    %55 = arith.addf %52, %54 : vector<1x128xf32>
    %cst_18 = arith.constant 0.000000e+00 : f32
    %56 = vector.broadcast %cst_18 : f32 to vector<1x128xf32>
    %57 = arith.subf %56, %55 : vector<1x128xf32>
    %58 = math.exp %57 : vector<1x128xf32>
    %cst_19 = arith.constant 1.000000e+00 : f32
    %59 = vector.broadcast %cst_19 : f32 to vector<1x128xf32>
    %60 = arith.addf %59, %58 : vector<1x128xf32>
    %cst_20 = arith.constant 1.000000e+00 : f32
    %61 = vector.broadcast %cst_20 : f32 to vector<1x128xf32>
    %62 = arith.divf %61, %60 : vector<1x128xf32>
    %cst_21 = arith.constant 1.200000e+00 : f32
    %63 = vector.broadcast %cst_21 : f32 to vector<1x128xf32>
    %64 = arith.mulf %62, %63 : vector<1x128xf32>
    %cst_22 = arith.constant -1.000000e-01 : f32
    %65 = vector.broadcast %cst_22 : f32 to vector<1x128xf32>
    %66 = arith.addf %64, %65 : vector<1x128xf32>
    %cst_23 = arith.constant 0.000000e+00 : f32
    %cst_24 = arith.constant 1.000000e+00 : f32
    %67 = vector.broadcast %cst_23 : f32 to vector<1x128xf32>
    %68 = arith.maximumf %67, %66 : vector<1x128xf32>
    %69 = vector.broadcast %cst_24 : f32 to vector<1x128xf32>
    %70 = arith.minimumf %69, %68 : vector<1x128xf32>
    %cst_25 = arith.constant -2.28322482 : f32
    %71 = vector.broadcast %cst_25 : f32 to vector<1x128xf32>
    %72 = arith.subf %55, %71 : vector<1x128xf32>
    %cst_26 = arith.constant 0.000000e+00 : f32
    %73 = vector.broadcast %cst_26 : f32 to vector<1x128xf32>
    %74 = arith.subf %73, %72 : vector<1x128xf32>
    %75 = math.exp %74 : vector<1x128xf32>
    %cst_27 = arith.constant 1.000000e+00 : f32
    %76 = vector.broadcast %cst_27 : f32 to vector<1x128xf32>
    %77 = arith.addf %76, %75 : vector<1x128xf32>
    %cst_28 = arith.constant 1.000000e+00 : f32
    %78 = vector.broadcast %cst_28 : f32 to vector<1x128xf32>
    %79 = arith.divf %78, %77 : vector<1x128xf32>
    %c0_29 = arith.constant 0 : index
    %c0_30 = arith.constant 0 : index
    %80 = vector.load %arg6[%c0_29, %c0_30] : memref<16x8xf32, #tpu.memory_space<vmem>>, vector<16x8xf32>
    %cst_31 = arith.constant dense<0.000000e+00> : vector<16x128xf32>
    %81 = tpu.matmul %80, %2, %cst_31 {dimension_numbers = #tpu.dot_dimension_numbers<[1], [0], [0], [1], [0, 0, 1, 1], [], []>} : vector<16x8xf32>, vector<8x128xf32>, vector<16x128xf32> -> vector<16x128xf32>
    %82 = vector.extract_strided_slice %81 {offsets = [0, 0], sizes = [8, 128], strides = [1, 1]} : vector<16x128xf32> to vector<8x128xf32>
    %83 = arith.mulf %82, %3 : vector<8x128xf32>
    %cst_32 = arith.constant dense<0.000000e+00> : vector<128xf32>
    %84 = vector.multi_reduction <add>, %83, %cst_32 [0] : vector<8x128xf32> to vector<128xf32>
    %85 = vector.shape_cast %84 : vector<128xf32> to vector<1x128xf32>
    %cst_33 = arith.constant 0.000000e+00 : f32
    %86 = vector.broadcast %cst_33 : f32 to vector<1x128xf32>
    %87 = arith.cmpf oge, %85, %86 : vector<1x128xf32>
    %cst_34 = arith.constant 2.000000e-01 : f32
    %88 = vector.broadcast %cst_34 : f32 to vector<1x128xf32>
    %89 = arith.mulf %88, %85 : vector<1x128xf32>
    %90 = arith.select %87, %85, %89 : vector<1x128xi1>, vector<1x128xf32>
    %91 = vector.extract_strided_slice %81 {offsets = [8, 0], sizes = [8, 128], strides = [1, 1]} : vector<16x128xf32> to vector<8x128xf32>
    %92 = arith.mulf %91, %3 : vector<8x128xf32>
    %cst_35 = arith.constant dense<0.000000e+00> : vector<128xf32>
    %93 = vector.multi_reduction <add>, %92, %cst_35 [0] : vector<8x128xf32> to vector<128xf32>
    %94 = vector.shape_cast %93 : vector<128xf32> to vector<1x128xf32>
    %95 = tpu.concatenate %70, %79, %90, %94 in 0 : vector<1x128xf32>, vector<1x128xf32>, vector<1x128xf32>, vector<1x128xf32> -> vector<4x128xf32>
    %c0_36 = arith.constant 0 : index
    %c0_37 = arith.constant 0 : index
    %96 = vector.load %arg7[%c0_36, %c0_37] : memref<4x128xf32, #tpu.memory_space<vmem>>, vector<4x128xf32>
    tpu.vector_store %arg7[%c0_36, %c0_37], %95 {strides = array<i32>} : memref<4x128xf32, #tpu.memory_space<vmem>>, vector<4x128xf32>,
    return
  }
  func.func @transform_0(%arg0: i32) -> (i32, i32) {
    %c0_i32 = arith.constant 0 : i32
    %c0_i32_0 = arith.constant 0 : i32
    return %c0_i32, %arg0 : i32, i32
  }
  func.func @transform_1(%arg0: i32) -> (i32, i32) {
    %c0_i32 = arith.constant 0 : i32
    %c0_i32_0 = arith.constant 0 : i32
    %c0_i32_1 = arith.constant 0 : i32
    return %c0_i32, %c0_i32_0 : i32, i32
  }
  func.func @transform_2(%arg0: i32) -> (i32, i32) {
    %c0_i32 = arith.constant 0 : i32
    %c0_i32_0 = arith.constant 0 : i32
    %c0_i32_1 = arith.constant 0 : i32
    return %c0_i32, %c0_i32_0 : i32, i32
  }
  func.func @transform_3(%arg0: i32) -> (i32, i32) {
    %c0_i32 = arith.constant 0 : i32
    %c0_i32_0 = arith.constant 0 : i32
    %c0_i32_1 = arith.constant 0 : i32
    return %c0_i32, %c0_i32_0 : i32, i32
  }
  func.func @transform_4(%arg0: i32) -> (i32, i32) {
    %c0_i32 = arith.constant 0 : i32
    %c0_i32_0 = arith.constant 0 : i32
    %c0_i32_1 = arith.constant 0 : i32
    return %c0_i32, %c0_i32_0 : i32, i32
  }
  func.func @transform_5(%arg0: i32) -> (i32, i32) {
    %c0_i32 = arith.constant 0 : i32
    %c0_i32_0 = arith.constant 0 : i32
    %c0_i32_1 = arith.constant 0 : i32
    return %c0_i32, %c0_i32_0 : i32, i32
  }
  func.func @transform_6(%arg0: i32) -> (i32, i32) {
    %c0_i32 = arith.constant 0 : i32
    %c0_i32_0 = arith.constant 0 : i32
    return %c0_i32, %arg0 : i32, i32
  }
}

</mosaic_0001>

<bundles_post_ra>
// kernel: tpu_custom_call.1
= control target key start
LH: loop header
LB: loop body
LE: loop exit
PB: predicated region body
PF: predicated region fallthrough
CT: control target
= control target key end

     0   :  { %s564_s0 = inlined_call_operand.vmem [shape: bf16[16,128], index: 0, kind: input, shape index: {}]   ;;  %s565_s1 = inlined_call_operand.vmem [shape: bf16[32,64], index: 1, kind: input, shape index: {}]   ;;  %s566_s2 = inlined_call_operand.vmem [shape: f32[32,1], index: 2, kind: input, shape index: {}]   ;;  %s567_s3 = inlined_call_operand.vmem [shape: f32[32,1], index: 3, kind: input, shape index: {}]   ;;  %s568_s4 = inlined_call_operand.<no memory space> [shape: f32[1,1], index: 4, kind: input, shape index: {}]   ;;  %s569_s5 = inlined_call_operand.vmem [shape: f32[16,8], index: 5, kind: input, shape index: {}]   ;;  %s570_s6 = inlined_call_operand.hbm [shape: f32[4,128], index: 6, kind: output, shape index: {}]  }
   0x1   :  { %v11_v0 = vstv %s568_s4 }
   0x2   :  { %12 = vst [vmem:[#allocation3] sm:$0x1] %v11_v0 }
   0x3   :  { %v376_v1 = vld [vmem:[%s564_s0] sm:$0xff]   ;;  %v31_v2 = vlaneseq  ;;  %vm121_vm0 = vcmask 523264   ;;  %vm248_vm1 = vcmask 64512   ;;  %v247_v7 = vld [vmem:[%s569_s5 + $0x8] sm:$0xff]  ;;  %v443_v18 = vmov 0   ;;  %v89_v19 = vld [vmem:[%s566_s2 + $0x10] sm:$0xff] }
   0x4   :  { %v377_v3 = vunpack.c.l.bf16 %v376_v1  ;;  %v409_v4 = vld [vmem:[%s565_s1] sm:$0xff]   ;;  %v497_v8 = vunpack.c.h.bf16 %v376_v1  ;;  %407 = vset.pattern.permute.xlu0 %v443_v18 }
   0x5   :  { %v489_v5 = vshrl.u32 %v31_v2, 7  ;;  %v246_v6 = vld [vmem:[%s569_s5] sm:$0xff]  ;;  %396 = vmatprep.mubr.msk.bf16.mxu0 %vm121_vm0, %v409_v4 }
   0x6   :  { %400 = vmatprep.subr.mxu1 %v377_v3  ;;  %v87_v9 = vld [vmem:[%s566_s2] sm:$0xff]  ;;  %402 = vmatprep.mubr.msk.f32.mxu1 %vm248_vm1, %v246_v6 }
   0x7   :  { %v33_v10 = vsub.s32 0, %v489_v5  ;;  %v38_v11 = vsub.s32 1, %v489_v5  ;;  %v45_v12 = vsub.s32 2, %v489_v5  ;;  %v50_v13 = vsub.s32 3, %v489_v5  ;;  %401 = vmatpush3.msra.mxu1 %v377_v3  ;;  %93 = vperm.xlu0 %407, %v87_v9  }
   0x8   :  { %v57_v14 = vsub.s32 4, %v489_v5  ;;  %v62_v15 = vsub.s32 5, %v489_v5  ;;  %v69_v16 = vsub.s32 6, %v489_v5  ;;  %v74_v17 = vsub.s32 7, %v489_v5  ;;  %403 = vmatmul.mubr.msk.f32.vlgmr.msra.gmra.mrb[0].mxu1 %vm248_vm1, %v247_v7 }
   0x9   :  { %v34_v20 = vrot.slane %v377_v3, %v33_v10  ;;  %v39_v21 = vrot.slane %v377_v3, %v38_v11  ;;  %v46_v22 = vrot.slane %v377_v3, %v45_v12  ;;  %v51_v23 = vrot.slane %v377_v3, %v50_v13 }
   0xa   :  { %13 = vsyncpa [#allocation5], 0  ;;  %v58_v24 = vrot.slane %v377_v3, %v57_v14  ;;  %v63_v25 = vrot.slane %v377_v3, %v62_v15  ;;  %v88_v26 = vld [vmem:[%s566_s2 + $0x8] sm:$0xff]  ;;  %408 = vset.pattern.permute.xlu1 %v443_v18  ;;  %v70_v31 = vrot.slane %v377_v3, %v69_v16  ;;  %v75_v32 = vrot.slane %v377_v3, %v74_v17  ;;  %v90_v33 = vld [vmem:[%s566_s2 + $0x18] sm:$0xff] }
   0xb   :  { %v35_v27 = vmul.f32 %v497_v8, %v34_v20  ;;  %v40_v28 = vmul.f32 %v497_v8, %v39_v21  ;;  %v47_v29 = vmul.f32 %v497_v8, %v46_v22  ;;  %v52_v30 = vmul.f32 %v497_v8, %v51_v23  ;;  %103 = vperm.xlu1 %408, %v89_v19   ;;  %v181_v38 = vld [vmem:[%s567_s3] sm:$0xff]  ;;  %v182_v39 = vld [vmem:[%s567_s3 + $0x8] sm:$0xff]  ;;  %v183_v43 = vld [vmem:[%s567_s3 + $0x10] sm:$0xff] }
   0xc   :  { %v59_v36 = vmul.f32 %v497_v8, %v58_v24  ;;  %v64_v37 = vmul.f32 %v497_v8, %v63_v25  ;;  %98 = vperm.xlu0 %407, %v88_v26   ;;  %v71_v41 = vmul.f32 %v497_v8, %v70_v31  ;;  %v76_v42 = vmul.f32 %v497_v8, %v75_v32  ;;  %v184_v44 = vld [vmem:[%s567_s3 + $0x18] sm:$0xff]  ;;  %v218_v46 = vld [vmem:[#allocation3] sm:$0x1]  ;;  %v410_v47 = vld [vmem:[%s565_s1 + $0x8] sm:$0xff]   ;;  %s444_s1 = smov [#allocation4]  }
   0xd   :  { %v41_v34 = vpack.c.bf16 %v40_v28, %v35_v27  ;;  %v53_v35 = vpack.c.bf16 %v52_v30, %v47_v29  ;;  %vm347_vm3 = vcmask 1040384   ;;  %vm349_vm4 = vcmask 1041408   ;;  %s360_s3 = sshll.u32 %s444_s1, 4  ;;  %s361_s3 = int_to_ptr.vmem [resolvable:$true] %s360_s3 }
   0xe   :  { %v65_v40 = vpack.c.bf16 %v64_v37, %v59_v36  ;;  %v77_v45 = vpack.c.bf16 %v76_v42, %v71_v41  ;;  %vm351_vm5 = vcmask 1042432   ;;  %s419_s21 = scalar_lea.vmem %s361_s3, 64  ;;  %p424_p1 = scmp.lt.s32.totalorder %s361_s3, %s361_s3 }
   0xf   :  { %388 = vmatprep.subr.bf16.mxu0 %v41_v34  ;;  %108 = vperm.xlu1 %408, %v90_v33   ;;  %p420_p0 = scmp.ne.s32.totalorder %s361_s3, %s419_s21  ;;  %p425_p2 = scmp.lt.s32.totalorder %s419_s21, %s419_s21 }
  0x10   :  { %389 = vmatpush3.bf16.msra.mxu0 %v41_v34  ;;  %187 = vperm.xlu0 %407, %v181_v38  }
  0x11   :  { %390 = vmatprep.subr.bf16.mxu0 %v53_v35  ;;  %p426_p3 = por %p425_p2, %p424_p1 }
  0x13   :  { %192 = vperm.xlu1 %408, %v182_v39   ;;  %p427_p4 = pnand %p426_p3, %p420_p0 }
  0x14   :  { %391 = vmatpush3.bf16.msra.mxu0 %v53_v35  ;;  %197 = vperm.xlu0 %407, %v183_v43  }
  0x15   :  { %392 = vmatprep.subr.bf16.mxu0 %v65_v40 }
  0x17   :  { %202 = vperm.xlu1 %408, %v184_v44  }
  0x18   :  { %393 = vmatpush3.bf16.msra.mxu0 %v65_v40  ;;  %221 = vperm.xlu0 %407, %v218_v46  }
  0x19   :  { %394 = vmatprep.subr.bf16.mxu0 %v77_v45 }
  0x1c   :  { %395 = vmatpush3.bf16.msra.mxu0 %v77_v45 }
  0x1f   :  { %397 = vmatmul.mubr.msk.bf16.vlgmr.msra.gmra.mrb[0].mxu0 %vm121_vm0, %v410_v47 }
  0x86   :  { %v94_v50 = vpop.permute.xlu0 %93 }
  0x8a   :  { %v104_v51 = vpop.permute.xlu1 %103 }
  0x8b   :  { %v99_v52 = vpop.permute.xlu0 %98 }
  0x8e   :  { %v109_v53 = vpop.permute.xlu1 %108 }
  0x8f   :  { %v188_v59 = vpop.permute.xlu0 %187 }
  0x92   :  { %v193_v0 = vpop.permute.xlu1 %192 }
  0x93   :  { %v198_v7 = vpop.permute.xlu0 %197 }
  0x96   :  { %v203_v12 = vpop.permute.xlu1 %202 }
  0x97   :  { %v222_v20 = vpop.permute.xlu0 %221 }
  0x98   :  { %v227_v22 = vrot.slane %v222_v20, %v33_v10 }
  0xdb   :  { %v404_v48 = vpop.f32.mrb[0].mxu1 }
  0xdc   :  { %v321_v49 = vpop.f32.mrb[1].mxu1  ;;  %v340_v32 = vmul.f32 %v404_v48, %v497_v8 }
  0xdd   :  { %v330_v30 = vmul.f32 %v497_v8, %v321_v49 }
  0xde   :  { %v341_v36 = vrot.slane %v340_v32, 4 }
  0xdf   :  { %v331_v31 = vrot.slane %v330_v30, 4 }
  0xe0   :  { %v342_v37 = vadd.f32 %v341_v36, %v340_v32 }
  0xe1   :  { %v332_v33 = vadd.f32 %v331_v31, %v330_v30 }
  0xe2   :  { %v343_v40 = vrot.slane %v342_v37, 2 }
  0xe3   :  { %v333_v5 = vrot.slane %v332_v33, 2 }
  0xe4   :  { %v344_v43 = vadd.f32 %v343_v40, %v342_v37 }
  0xe5   :  { %v334_v38 = vadd.f32 %v333_v5, %v332_v33 }
  0xe6   :  { %v345_v47 = vrot.slane %v344_v43, 1 }
  0xe7   :  { %v335_v41 = vrot.slane %v334_v38, 1 }
  0xe9   :  { %v336_v44 = vadd.f32 %v335_v41, %v334_v38 }
  0xeb   :  { %v338_v48 = vmul.f32 0.2, %v336_v44  ;;  %vm337_vm2 = vcmp.ge.f32.partialorder %v336_v44, 0.0 }
  0xf2   :  { %v398_v54 = vpop.f32.mrb[0].mxu0 }
  0xf3   :  { %v162_v55 = vpop.f32.mrb[1].mxu0  ;;  %v171_v56 = vadd.f32 %v398_v54, %v104_v51  ;;  %v339_v51 = vsel %vm337_vm2, %v336_v44, %v338_v48 }
  0xf4   :  { %v163_v57 = vadd.f32 %v162_v55, %v94_v50  ;;  %v399_v58 = vpop.f32.mrb[2].mxu0 }
  0xf5   :  { %v165_v60 = vpop.f32.mrb[3].mxu0  ;;  %v174_v62 = vadd.f32 %v399_v58, %v109_v53  ;;  %v179_v1 = vmax.f32 %v171_v56, 0.0 }
  0xf6   :  { %v177_v61 = vmax.f32 %v163_v57, 0.0  ;;  %v166_v63 = vadd.f32 %v165_v60, %v99_v52  ;;  %v346_v52 = vadd.f32 %v345_v47, %v344_v43 }
  0xf7   :  { %v180_v4 = vmax.f32 %v174_v62, 0.0  ;;  %v207_v9 = vmul.f32 %v198_v7, %v179_v1 }
  0xf8   :  { %v178_v2 = vmax.f32 %v166_v63, 0.0  ;;  %v205_v3 = vmul.f32 %v188_v59, %v177_v61 }
  0xf9   :  { %v208_v13 = vmul.f32 %v203_v12, %v180_v4 }
  0xfa   :  { %v206_v6 = vmul.f32 %v193_v0, %v178_v2 }
  0xfc   :  { %v209_v11 = vadd.f32 %v206_v6, %v205_v3 }
  0xfe   :  { %v210_v14 = vadd.f32 %v209_v11, %v207_v9 }
 0x100   :  { %v211_v15 = vadd.f32 %v210_v14, %v208_v13 }
 0x102   :  { %v212_v16 = vrot.slane %v211_v15, 4 }
 0x104   :  { %v213_v17 = vadd.f32 %v212_v16, %v211_v15 }
 0x106   :  { %v214_v18 = vrot.slane %v213_v17, 2 }
 0x108   :  { %v215_v19 = vadd.f32 %v214_v18, %v213_v17 }
 0x10a   :  { %v216_v21 = vrot.slane %v215_v19, 1 }
 0x10c   :  { %v217_v23 = vadd.f32 %v216_v21, %v215_v19 }
 0x10e   :  { %v228_v24 = vadd.f32 %v227_v22, %v217_v23 }
 0x110   :  { %v229_v25 = vsub.f32 0.0, %v228_v24  ;;  %v372_v26 = vadd.f32 2.2832248, %v228_v24 }
 0x112   :  { %v240_v27 = vsub.f32 0.0, %v372_v26  ;;  %v230_v28 = vmul.f32 1.442695, %v229_v25 }
 0x114   :  { %v241_v29 = vmul.f32 1.442695, %v240_v27  ;;  %411 = vpow2.f32 %v230_v28 }
 0x116   :  { %413 = vpow2.f32 %v241_v29 }
 0x11e   :  { %v412_v34 = vpop.eup %411 }
 0x11f   :  { %v232_v35 = vadd.f32 1.0, %v412_v34 }
 0x120   :  { %v414_v10 = vpop.eup %413 }
 0x121   :  { %415 = vrcp.f32 %v232_v35  ;;  %v243_v39 = vadd.f32 1.0, %v414_v10 }
 0x123   :  { %417 = vrcp.f32 %v243_v39 }
 0x12b   :  { %v416_v42 = vpop.eup %415 }
 0x12c   :  { %v235_v45 = vmul.f32 1.2, %v416_v42 }
 0x12d   :  { %v418_v50 = vpop.eup %417 }
 0x12e   :  { %v236_v46 = vadd.f32 -0.1, %v235_v45 }
 0x130   :  { %v237_v8 = vmax.f32 %v236_v46, 0.0 }
 0x132   :  { %v238_v49 = vmin.f32 %v237_v8, 1.0 }
 0x134   :  { %v348_v53 = vsel %vm347_vm3, %v238_v49, %v418_v50 }
 0x135   :  { %v350_v54 = vsel %vm349_vm4, %v348_v53, %v339_v51 }
 0x136   :  { %v352_v55 = vsel %vm351_vm5, %v350_v54, %v346_v52 }
 0x137   :  { %353 = vst [vmem:[#allocation4] sm:$0xf] %v352_v55 }
 0x138   :  { %430 = shalt.err (!%p427_p4)
}
 0x139   :  { %s431_s24 = scalar_lea.hbm %s570_s6, 64 }
 0x13a   :  { %p432_p5 = scmp.ne.s32.totalorder %s570_s6, %s431_s24  ;;  %p435_p6 = scmp.lt.u32.totalorder %s431_s24, %s570_s6 }
 0x13c   :  { %p437_p7 = pnand %p435_p6, %p432_p5 }
 0x13e   :  { %440 = shalt.err (!%p437_p7)
}
 0x13f   :  { %363 = dma.vmem_to_hbm [thread:$0]  %s361_s3, 64, %s570_s6, [#allocation5]  }
 0x140   :  { %441 = dma.done.wait [#allocation5], 64  }
 0x141   :  { %442 = vsyncadd [#allocation5], 4294967232 }
 0x142   :  { %367 = vsyncpa [#allocation5], 1 }

</bundles_post_ra>
